<compile_context>
chip_gen: v7x
topology: tpu7x:2x2x1
jax: 0.10.0
libtpu: 0.0.40
codegen_flags: <defaults>
</compile_context>

<pallas_src>
import functools
import math

import jax
import jax.numpy as jnp
from jax.experimental import pallas as pl
from jax.experimental.pallas import tpu as pltpu


def _choose_batch_tile(B, T, target_rows=256, min_rows=128):
    """Pick batch elements per grid step so Bt*T ~ 128-256 MXU rows."""
    bt = max(1, min(B, target_rows // max(T, 1)))
    while bt > 1 and B % bt:
        bt -= 1
    # v7x megacore: prefer an even grid (2 TCs) when splitting still keeps the
    # per-step matmul M above min_rows (otherwise per-step overhead dominates).
    if B // bt == 1 and B % 2 == 0 and (B // 2) * T >= min_rows:
        bt = B // 2
    return bt


def _gelu_compute_dtype():
    """bf16 NewGELU on v6e/v7x (bf16 VPU/EUP path); f32 on v5e and older."""
    try:
        kind = jax.devices()[0].device_kind.lower()
    except Exception:
        return jnp.float32
    for old in ("v2", "v3", "v4", "v5"):
        if old in kind:
            return jnp.float32
    return jnp.bfloat16


# ----------------------------------------------------------------------------
# Kernel: one grid step = Bt batch elements (full sequences resident in VMEM).
# ----------------------------------------------------------------------------
def _block_kernel(
    x_ref,
    mask_ref,                 # (H*T, H*T) additive causal + cross-head mask
    ln1g_ref, ln1b_ref,
    wqkv_ref, bqkv_ref,
    wo_ref, bo_ref,
    ln2g_ref, ln2b_ref,
    wfc_ref, bfc_ref,
    wpj_ref, bpj_ref,
    o_ref,
    att_ref,                  # VMEM scratch (Bt, T, C) f32
    *, num_heads, gelu_dtype,
):
    Bt, T, C = x_ref.shape
    H = num_heads
    D = C // H
    M = Bt * T
    eps = 1e-5

    # Collapse (Bt, T) -> rows: all row-parallel ops run on (M, C).
    x = x_ref[...].astype(jnp.float32).reshape(M, C)

    def layernorm(z, g_ref, b_ref):                 # z: (M, C) f32
        mu = jnp.mean(z, axis=-1, keepdims=True)
        var = jnp.mean(jnp.square(z - mu), axis=-1, keepdims=True)
        return (z - mu) * jax.lax.rsqrt(var + eps) * g_ref[...] + b_ref[...]

    # ---------------- attention branch ----------------
    xn1 = layernorm(x, ln1g_ref, ln1b_ref)                           # (M, C)
    # Fused QKV projection (1/sqrt(D) pre-folded into the q columns/bias).
    qkv = jnp.dot(xn1.astype(jnp.bfloat16), wqkv_ref[...],
                  preferred_element_type=jnp.float32) + bqkv_ref[...]  # (M, 3C)

    # Head-major relayout without transpose: (M, C) -> (Bt, H*T, D),
    # rows ordered (head, time) within each batch element.
    def split_heads(z2):
        z3 = z2.reshape(Bt, T, C)
        return jnp.concatenate(
            [z3[:, :, h * D:(h + 1) * D] for h in range(H)], axis=1)

    qh = split_heads(qkv[:, 0:C]).astype(jnp.bfloat16)               # (Bt, HT, D)
    kh = split_heads(qkv[:, C:2 * C]).astype(jnp.bfloat16)
    vh = split_heads(qkv[:, 2 * C:3 * C]).astype(jnp.bfloat16)

    # Single score matmul for all heads; mask kills cross-head entries.
    s = jnp.einsum('bqd,bkd->bqk', qh, kh,
                   preferred_element_type=jnp.float32)               # (Bt, HT, HT)
    s = s + mask_ref[...]
    s = s - jnp.max(s, axis=-1, keepdims=True)
    p = jnp.exp(s)
    p = p * pl.reciprocal(jnp.sum(p, axis=-1, keepdims=True), approx=True)
    pv = jnp.einsum('bqk,bkd->bqd', p.astype(jnp.bfloat16), vh,
                    preferred_element_type=jnp.float32)              # (Bt, HT, D)

    # Scatter head outputs back to their lane slices via VMEM scratch
    # (static slice stores; no lane-axis concatenate).
    for h in range(H):
        att_ref[:, :, h * D:(h + 1) * D] = pv[:, h * T:(h + 1) * T, :]
    att = att_ref[...].reshape(M, C).astype(jnp.bfloat16)

    attn_out = jnp.dot(att, wo_ref[...],
                       preferred_element_type=jnp.float32) + bo_ref[...]
    x = x + attn_out                                # residual 1 (f32 path)

    # ---------------- MLP branch ----------------
    xn2 = layernorm(x, ln2g_ref, ln2b_ref)
    h_fc = jnp.dot(xn2.astype(jnp.bfloat16), wfc_ref[...],
                   preferred_element_type=jnp.float32) + bfc_ref[...]  # (M, 4C)
    # NewGELU (tanh approximation, exactly as in the PyTorch module).
    hg = h_fc.astype(gelu_dtype)
    g = 0.5 * hg * (1.0 + jnp.tanh(
        math.sqrt(2.0 / math.pi) * (hg + 0.044715 * hg * hg * hg)))
    mlp_out = jnp.dot(g.astype(jnp.bfloat16), wpj_ref[...],
                      preferred_element_type=jnp.float32) + bpj_ref[...]
    x = x + mlp_out                                 # residual 2

    o_ref[...] = x.reshape(Bt, T, C).astype(o_ref.dtype)


# ----------------------------------------------------------------------------
# Wrapper: pack/cast weights, batch-tile the grid, keep weights/mask resident.
# ----------------------------------------------------------------------------
def transformer_block(x, params, num_heads, *, matmul_dtype=jnp.bfloat16):
    B, T, C = x.shape
    H = num_heads
    D = C // H
    Bt = _choose_batch_tile(B, T)
    assert B % Bt == 0

    # Fold the 1/sqrt(D) attention scale into the q projection (compile-time).
    scale = 1.0 / math.sqrt(D)
    wq = params['wq'] * scale
    bq = params['bq'] * scale
    # Fused QKV weights (in, out) pre-cast to bf16 (MXU-native); biases f32.
    wqkv = jnp.concatenate([wq, params['wk'], params['wv']], axis=1).astype(matmul_dtype)
    bqkv = jnp.concatenate([bq, params['bk'], params['bv']], axis=1).astype(jnp.float32)

    # Combined causal + cross-head additive mask for the (H*T, H*T) attention
    # with rows/cols ordered (head, time).  Precomputed once, resident in VMEM.
    HT = H * T
    r = jnp.arange(HT)
    h_idx = r // T
    t_idx = r % T
    allowed = (h_idx[:, None] == h_idx[None, :]) & (t_idx[None, :] <= t_idx[:, None])
    mask_add = jnp.where(allowed, 0.0, -1e30).astype(jnp.float32)

    args = (
        x,
        mask_add,
        params['ln1_g'].astype(jnp.float32), params['ln1_b'].astype(jnp.float32),
        wqkv, bqkv,
        params['wo'].astype(matmul_dtype), params['bo'].astype(jnp.float32),
        params['ln2_g'].astype(jnp.float32), params['ln2_b'].astype(jnp.float32),
        params['wfc'].astype(matmul_dtype), params['bfc'].astype(jnp.float32),
        params['wpj'].astype(matmul_dtype), params['bpj'].astype(jnp.float32),
    )

    # Activations tiled over the batch grid; every parameter (all rank-2) is a
    # full-extent block with a constant index_map -> resident across steps.
    x_spec = pl.BlockSpec((Bt, T, C), lambda b: (b, 0, 0))
    param_specs = [pl.BlockSpec(a.shape, lambda b: (0, 0)) for a in args[1:]]
    out_spec = pl.BlockSpec((Bt, T, C), lambda b: (b, 0, 0))

    # Explicit VMEM budget sized for this Bt/T/C (params double-buffered +
    # rough f32 working set); clamped to stay under v7x's smaller VMEM.
    nbytes = lambda a: a.size * a.dtype.itemsize
    param_bytes = sum(nbytes(a) for a in args[1:])
    interm_bytes = 4 * Bt * (T * 8 * C + 3 * HT * HT + T * 8 * C)
    vmem_limit = int(min(64 << 20,
                         max(16 << 20,
                             2 * param_bytes + 4 * Bt * T * C * 4 + 2 * interm_bytes)))

    # NOTE: at C=32 every vector op / store uses only 32/128 lanes; for real
    # model sizes keep the last dim of activation blocks a multiple of 128.
    return pl.pallas_call(
        functools.partial(_block_kernel, num_heads=H,
                          gelu_dtype=_gelu_compute_dtype()),
        out_shape=jax.ShapeDtypeStruct((B, T, C), x.dtype),
        grid=(B // Bt,),
        in_specs=[x_spec] + param_specs,
        out_specs=out_spec,
        scratch_shapes=[pltpu.VMEM((Bt, T, C), jnp.float32)],
        input_output_aliases={0: 0},   # residual update: out aliases x buffer
        compiler_params=pltpu.CompilerParams(
            dimension_semantics=("parallel",),
            vmem_limit_bytes=vmem_limit),
    )(*args)


# ----------------------------------------------------------------------------
# Pure-JAX f32 reference (same math as the PyTorch module) for correctness.
# ----------------------------------------------------------------------------
def transformer_block_ref(x, p, num_heads):
    B, T, C = x.shape
    D = C // num_heads

    def ln(z, g, b):
        mu = jnp.mean(z, axis=-1, keepdims=True)
        var = jnp.mean((z - mu) ** 2, axis=-1, keepdims=True)
        return (z - mu) / jnp.sqrt(var + 1e-5) * g + b

    xn = ln(x, p['ln1_g'], p['ln1_b'])
    q = xn @ p['wq'] + p['bq']
    k = xn @ p['wk'] + p['bk']
    v = xn @ p['wv'] + p['bv']
    q = q.reshape(B, T, num_heads, D).transpose(0, 2, 1, 3)
    k = k.reshape(B, T, num_heads, D).transpose(0, 2, 1, 3)
    v = v.reshape(B, T, num_heads, D).transpose(0, 2, 1, 3)
    s = jnp.einsum('bhtd,bhsd->bhts', q, k) / math.sqrt(D)
    mask = jnp.tril(jnp.ones((T, T), dtype=bool))
    s = jnp.where(mask[None, None], s, -jnp.inf)
    w = jax.nn.softmax(s, axis=-1)
    att = jnp.einsum('bhts,bhsd->bhtd', w, v).transpose(0, 2, 1, 3).reshape(B, T, C)
    x = x + att @ p['wo'] + p['bo']
    xn2 = ln(x, p['ln2_g'], p['ln2_b'])
    h = xn2 @ p['wfc'] + p['bfc']
    g = 0.5 * h * (1.0 + jnp.tanh(math.sqrt(2.0 / math.pi) * (h + 0.044715 * h ** 3)))
    return x + g @ p['wpj'] + p['bpj']


if __name__ == "__main__":
    # small config consistent with the module: n_embd=32, n_head=4, block_size=8
    B, T, C, H = 2, 8, 32, 4
    key = jax.random.PRNGKey(0)
    ks = jax.random.split(key, 16)

    def w(k, shape, scale=0.02):
        return (scale * jax.random.normal(k, shape)).astype(jnp.float32)

    params = {
        'ln1_g': jnp.ones((1, C), jnp.float32),
        'ln1_b': jnp.zeros((1, C), jnp.float32),
        'wq': w(ks[0], (C, C)), 'bq': w(ks[1], (1, C)),
        'wk': w(ks[2], (C, C)), 'bk': w(ks[3], (1, C)),
        'wv': w(ks[4], (C, C)), 'bv': w(ks[5], (1, C)),
        'wo': w(ks[6], (C, C)), 'bo': w(ks[7], (1, C)),
        'ln2_g': jnp.ones((1, C), jnp.float32),
        'ln2_b': jnp.zeros((1, C), jnp.float32),
        'wfc': w(ks[8], (C, 4 * C)), 'bfc': w(ks[9], (1, 4 * C)),
        'wpj': w(ks[10], (4 * C, C)), 'bpj': w(ks[11], (1, C)),
    }

    x = jax.random.normal(ks[12], (B, T, C), dtype=jnp.float32)

    # Compute the reference BEFORE the kernel call: the kernel aliases its
    # output onto the input buffer (input_output_aliases), so treat x as
    # consumed by the call.
    ref = transformer_block_ref(x, params, H)

    out = transformer_block(x, params, H)
    out = jax.block_until_ready(out)

    assert out.shape == (B, T, C)
    # bf16 matmul operands + approx reciprocal -> relaxed tolerance vs f32 ref.
    max_err = float(jnp.max(jnp.abs(out - ref)))
    assert jnp.allclose(out, ref, atol=2e-2, rtol=2e-2), \
        f"mismatch vs reference (max_err={max_err})"

    print("KERNEL_OK")
</pallas_src>

<mosaic_0001>
module attributes {stable_mosaic.version = 11 : i64} {
  func.func @_block_kernel(%arg0: i32, %arg1: memref<2x8x32xf32, #tpu.memory_space<vmem>>, %arg2: memref<32x32xf32, #tpu.memory_space<vmem>>, %arg3: memref<1x32xf32, #tpu.memory_space<vmem>>, %arg4: memref<1x32xf32, #tpu.memory_space<vmem>>, %arg5: memref<32x96xbf16, #tpu.memory_space<vmem>>, %arg6: memref<1x96xf32, #tpu.memory_space<vmem>>, %arg7: memref<32x32xbf16, #tpu.memory_space<vmem>>, %arg8: memref<1x32xf32, #tpu.memory_space<vmem>>, %arg9: memref<1x32xf32, #tpu.memory_space<vmem>>, %arg10: memref<1x32xf32, #tpu.memory_space<vmem>>, %arg11: memref<32x128xbf16, #tpu.memory_space<vmem>>, %arg12: memref<1x128xf32, #tpu.memory_space<vmem>>, %arg13: memref<128x32xbf16, #tpu.memory_space<vmem>>, %arg14: memref<1x32xf32, #tpu.memory_space<vmem>>, %arg15: memref<2x8x32xf32, #tpu.memory_space<vmem>>, %arg16: memref<2x8x32xf32, #tpu.memory_space<vmem>>) attributes {dimension_semantics = [#tpu.dimension_semantics<parallel>], iteration_bounds = array<i64: 1>, scalar_prefetch = 0 : i64, scratch_operands = 1 : i64, tpu.core_type = #tpu.core_type<tc>, window_params = [{transform_indices = @transform_0, window_bounds = array<i64: 2, 8, 32>}, {pipeline_mode = #tpu.pipeline_mode<synchronous>, transform_indices = @transform_1, window_bounds = array<i64: 32, 32>}, {pipeline_mode = #tpu.pipeline_mode<synchronous>, transform_indices = @transform_2, window_bounds = array<i64: 1, 32>}, {pipeline_mode = #tpu.pipeline_mode<synchronous>, transform_indices = @transform_3, window_bounds = array<i64: 1, 32>}, {pipeline_mode = #tpu.pipeline_mode<synchronous>, transform_indices = @transform_4, window_bounds = array<i64: 32, 96>}, {pipeline_mode = #tpu.pipeline_mode<synchronous>, transform_indices = @transform_5, window_bounds = array<i64: 1, 96>}, {pipeline_mode = #tpu.pipeline_mode<synchronous>, transform_indices = @transform_6, window_bounds = array<i64: 32, 32>}, {pipeline_mode = #tpu.pipeline_mode<synchronous>, transform_indices = @transform_7, window_bounds = array<i64: 1, 32>}, {pipeline_mode = #tpu.pipeline_mode<synchronous>, transform_indices = @transform_8, window_bounds = array<i64: 1, 32>}, {pipeline_mode = #tpu.pipeline_mode<synchronous>, transform_indices = @transform_9, window_bounds = array<i64: 1, 32>}, {pipeline_mode = #tpu.pipeline_mode<synchronous>, transform_indices = @transform_10, window_bounds = array<i64: 32, 128>}, {pipeline_mode = #tpu.pipeline_mode<synchronous>, transform_indices = @transform_11, window_bounds = array<i64: 1, 128>}, {pipeline_mode = #tpu.pipeline_mode<synchronous>, transform_indices = @transform_12, window_bounds = array<i64: 128, 32>}, {pipeline_mode = #tpu.pipeline_mode<synchronous>, transform_indices = @transform_13, window_bounds = array<i64: 1, 32>}, {transform_indices = @transform_14, window_bounds = array<i64: 2, 8, 32>}]} {
    %c0 = arith.constant 0 : index
    %c0_0 = arith.constant 0 : index
    %c0_1 = arith.constant 0 : index
    %0 = vector.load %arg1[%c0, %c0_0, %c0_1] : memref<2x8x32xf32, #tpu.memory_space<vmem>>, vector<2x8x32xf32>
    %1 = vector.shape_cast %0 : vector<2x8x32xf32> to vector<16x32xf32>
    %cst = arith.constant dense<0.000000e+00> : vector<16xf32>
    %2 = vector.multi_reduction <add>, %1, %cst [1] : vector<16x32xf32> to vector<16xf32>
    %3 = vector.shape_cast %2 : vector<16xf32> to vector<16x1xf32>
    %cst_2 = arith.constant 3.200000e+01 : f32
    %4 = vector.broadcast %cst_2 : f32 to vector<16x1xf32>
    %5 = arith.divf %3, %4 : vector<16x1xf32>
    %6 = vector.broadcast %5 : vector<16x1xf32> to vector<16x32xf32>
    %7 = arith.subf %1, %6 : vector<16x32xf32>
    %8 = arith.mulf %7, %7 : vector<16x32xf32>
    %cst_3 = arith.constant dense<0.000000e+00> : vector<16xf32>
    %9 = vector.multi_reduction <add>, %8, %cst_3 [1] : vector<16x32xf32> to vector<16xf32>
    %10 = vector.shape_cast %9 : vector<16xf32> to vector<16x1xf32>
    %cst_4 = arith.constant 3.200000e+01 : f32
    %11 = vector.broadcast %cst_4 : f32 to vector<16x1xf32>
    %12 = arith.divf %10, %11 : vector<16x1xf32>
    %13 = vector.broadcast %5 : vector<16x1xf32> to vector<16x32xf32>
    %14 = arith.subf %1, %13 : vector<16x32xf32>
    %cst_5 = arith.constant 9.99999974E-6 : f32
    %15 = vector.broadcast %cst_5 : f32 to vector<16x1xf32>
    %16 = arith.addf %12, %15 : vector<16x1xf32>
    %17 = math.rsqrt %16 : vector<16x1xf32>
    %18 = vector.broadcast %17 : vector<16x1xf32> to vector<16x32xf32>
    %19 = arith.mulf %14, %18 : vector<16x32xf32>
    %c0_6 = arith.constant 0 : index
    %c0_7 = arith.constant 0 : index
    %20 = vector.load %arg3[%c0_6, %c0_7] : memref<1x32xf32, #tpu.memory_space<vmem>>, vector<1x32xf32>
    %21 = vector.broadcast %20 : vector<1x32xf32> to vector<16x32xf32>
    %22 = arith.mulf %19, %21 : vector<16x32xf32>
    %c0_8 = arith.constant 0 : index
    %c0_9 = arith.constant 0 : index
    %23 = vector.load %arg4[%c0_8, %c0_9] : memref<1x32xf32, #tpu.memory_space<vmem>>, vector<1x32xf32>
    %24 = vector.broadcast %23 : vector<1x32xf32> to vector<16x32xf32>
    %25 = arith.addf %22, %24 : vector<16x32xf32>
    %26 = arith.truncf %25 : vector<16x32xf32> to vector<16x32xbf16>
    %c0_10 = arith.constant 0 : index
    %c0_11 = arith.constant 0 : index
    %27 = vector.load %arg5[%c0_10, %c0_11] : memref<32x96xbf16, #tpu.memory_space<vmem>>, vector<32x96xbf16>
    %cst_12 = arith.constant dense<0.000000e+00> : vector<16x96xf32>
    %28 = tpu.matmul %26, %27, %cst_12 {dimension_numbers = #tpu.dot_dimension_numbers<[1], [0], [0], [1], [0, 0, 1, 1], [], []>} : vector<16x32xbf16>, vector<32x96xbf16>, vector<16x96xf32> -> vector<16x96xf32>
    %c0_13 = arith.constant 0 : index
    %c0_14 = arith.constant 0 : index
    %29 = vector.load %arg6[%c0_13, %c0_14] : memref<1x96xf32, #tpu.memory_space<vmem>>, vector<1x96xf32>
    %30 = vector.broadcast %29 : vector<1x96xf32> to vector<16x96xf32>
    %31 = arith.addf %28, %30 : vector<16x96xf32>
    %32 = vector.extract_strided_slice %31 {offsets = [0, 0], sizes = [16, 32], strides = [1, 1]} : vector<16x96xf32> to vector<16x32xf32>
    %33 = vector.shape_cast %32 : vector<16x32xf32> to vector<2x8x32xf32>
    %34 = vector.extract_strided_slice %33 {offsets = [0, 0, 0], sizes = [2, 8, 8], strides = [1, 1, 1]} : vector<2x8x32xf32> to vector<2x8x8xf32>
    %35 = vector.extract_strided_slice %33 {offsets = [0, 0, 8], sizes = [2, 8, 8], strides = [1, 1, 1]} : vector<2x8x32xf32> to vector<2x8x8xf32>
    %36 = vector.extract_strided_slice %33 {offsets = [0, 0, 16], sizes = [2, 8, 8], strides = [1, 1, 1]} : vector<2x8x32xf32> to vector<2x8x8xf32>
    %37 = vector.extract_strided_slice %33 {offsets = [0, 0, 24], sizes = [2, 8, 8], strides = [1, 1, 1]} : vector<2x8x32xf32> to vector<2x8x8xf32>
    %38 = tpu.concatenate %34, %35, %36, %37 in 1 : vector<2x8x8xf32>, vector<2x8x8xf32>, vector<2x8x8xf32>, vector<2x8x8xf32> -> vector<2x32x8xf32>
    %39 = arith.truncf %38 : vector<2x32x8xf32> to vector<2x32x8xbf16>
    %40 = vector.extract_strided_slice %31 {offsets = [0, 32], sizes = [16, 32], strides = [1, 1]} : vector<16x96xf32> to vector<16x32xf32>
    %41 = vector.shape_cast %40 : vector<16x32xf32> to vector<2x8x32xf32>
    %42 = vector.extract_strided_slice %41 {offsets = [0, 0, 0], sizes = [2, 8, 8], strides = [1, 1, 1]} : vector<2x8x32xf32> to vector<2x8x8xf32>
    %43 = vector.extract_strided_slice %41 {offsets = [0, 0, 8], sizes = [2, 8, 8], strides = [1, 1, 1]} : vector<2x8x32xf32> to vector<2x8x8xf32>
    %44 = vector.extract_strided_slice %41 {offsets = [0, 0, 16], sizes = [2, 8, 8], strides = [1, 1, 1]} : vector<2x8x32xf32> to vector<2x8x8xf32>
    %45 = vector.extract_strided_slice %41 {offsets = [0, 0, 24], sizes = [2, 8, 8], strides = [1, 1, 1]} : vector<2x8x32xf32> to vector<2x8x8xf32>
    %46 = tpu.concatenate %42, %43, %44, %45 in 1 : vector<2x8x8xf32>, vector<2x8x8xf32>, vector<2x8x8xf32>, vector<2x8x8xf32> -> vector<2x32x8xf32>
    %47 = arith.truncf %46 : vector<2x32x8xf32> to vector<2x32x8xbf16>
    %48 = vector.extract_strided_slice %31 {offsets = [0, 64], sizes = [16, 32], strides = [1, 1]} : vector<16x96xf32> to vector<16x32xf32>
    %49 = vector.shape_cast %48 : vector<16x32xf32> to vector<2x8x32xf32>
    %50 = vector.extract_strided_slice %49 {offsets = [0, 0, 0], sizes = [2, 8, 8], strides = [1, 1, 1]} : vector<2x8x32xf32> to vector<2x8x8xf32>
    %51 = vector.extract_strided_slice %49 {offsets = [0, 0, 8], sizes = [2, 8, 8], strides = [1, 1, 1]} : vector<2x8x32xf32> to vector<2x8x8xf32>
    %52 = vector.extract_strided_slice %49 {offsets = [0, 0, 16], sizes = [2, 8, 8], strides = [1, 1, 1]} : vector<2x8x32xf32> to vector<2x8x8xf32>
    %53 = vector.extract_strided_slice %49 {offsets = [0, 0, 24], sizes = [2, 8, 8], strides = [1, 1, 1]} : vector<2x8x32xf32> to vector<2x8x8xf32>
    %54 = tpu.concatenate %50, %51, %52, %53 in 1 : vector<2x8x8xf32>, vector<2x8x8xf32>, vector<2x8x8xf32>, vector<2x8x8xf32> -> vector<2x32x8xf32>
    %55 = arith.truncf %54 : vector<2x32x8xf32> to vector<2x32x8xbf16>
    "tpu.trace_start"() <{level = 10 : i32, message = "bqd,bkd->bqk"}> : () -> ()
    %cst_15 = arith.constant dense<0.000000e+00> : vector<2x32x32xf32>
    %56 = tpu.matmul %39, %47, %cst_15 {dimension_numbers = #tpu.dot_dimension_numbers<[2], [2], [1], [1], [0, 0, 0, 1, 1, 1], [0], [0]>} : vector<2x32x8xbf16>, vector<2x32x8xbf16>, vector<2x32x32xf32> -> vector<2x32x32xf32>
    "tpu.trace_stop"() : () -> ()
    %c0_16 = arith.constant 0 : index
    %c0_17 = arith.constant 0 : index
    %57 = vector.load %arg2[%c0_16, %c0_17] : memref<32x32xf32, #tpu.memory_space<vmem>>, vector<32x32xf32>
    %58 = vector.shape_cast %57 : vector<32x32xf32> to vector<1x32x32xf32>
    %59 = vector.broadcast %58 : vector<1x32x32xf32> to vector<2x32x32xf32>
    %60 = arith.addf %56, %59 : vector<2x32x32xf32>
    %cst_18 = arith.constant dense<0xFF800000> : vector<2x32xf32>
    %61 = vector.multi_reduction <maximumf>, %60, %cst_18 [2] : vector<2x32x32xf32> to vector<2x32xf32>
    %62 = vector.shape_cast %61 : vector<2x32xf32> to vector<2x32x1xf32>
    %63 = vector.broadcast %62 : vector<2x32x1xf32> to vector<2x32x32xf32>
    %64 = arith.subf %60, %63 : vector<2x32x32xf32>
    %65 = math.exp %64 : vector<2x32x32xf32>
    %cst_19 = arith.constant dense<0.000000e+00> : vector<2x32xf32>
    %66 = vector.multi_reduction <add>, %65, %cst_19 [2] : vector<2x32x32xf32> to vector<2x32xf32>
    %67 = vector.shape_cast %66 : vector<2x32xf32> to vector<2x32x1xf32>
    %68 = tpu.reciprocal %67 {approx = true} : vector<2x32x1xf32> -> vector<2x32x1xf32>
    %69 = vector.broadcast %68 : vector<2x32x1xf32> to vector<2x32x32xf32>
    %70 = arith.mulf %65, %69 : vector<2x32x32xf32>
    %71 = arith.truncf %70 : vector<2x32x32xf32> to vector<2x32x32xbf16>
    "tpu.trace_start"() <{level = 10 : i32, message = "bqk,bkd->bqd"}> : () -> ()
    %cst_20 = arith.constant dense<0.000000e+00> : vector<2x32x8xf32>
    %72 = tpu.matmul %71, %55, %cst_20 {dimension_numbers = #tpu.dot_dimension_numbers<[2], [1], [1], [2], [0, 0, 0, 1, 1, 2], [0], [0]>} : vector<2x32x32xbf16>, vector<2x32x8xbf16>, vector<2x32x8xf32> -> vector<2x32x8xf32>
    "tpu.trace_stop"() : () -> ()
    %73 = vector.extract_strided_slice %72 {offsets = [0, 0, 0], sizes = [2, 8, 8], strides = [1, 1, 1]} : vector<2x32x8xf32> to vector<2x8x8xf32>
    %c0_21 = arith.constant 0 : index
    %c0_22 = arith.constant 0 : index
    %c0_23 = arith.constant 0 : index
    %74 = vector.load %arg16[%c0_21, %c0_22, %c0_23] : memref<2x8x32xf32, #tpu.memory_space<vmem>>, vector<2x8x8xf32>
    tpu.vector_store %arg16[%c0_21, %c0_22, %c0_23], %73 {strides = array<i32>} : memref<2x8x32xf32, #tpu.memory_space<vmem>>, vector<2x8x8xf32>,
    %75 = vector.extract_strided_slice %72 {offsets = [0, 8, 0], sizes = [2, 8, 8], strides = [1, 1, 1]} : vector<2x32x8xf32> to vector<2x8x8xf32>
    %c0_24 = arith.constant 0 : index
    %c0_25 = arith.constant 0 : index
    %c8 = arith.constant 8 : index
    %76 = vector.load %arg16[%c0_24, %c0_25, %c8] : memref<2x8x32xf32, #tpu.memory_space<vmem>>, vector<2x8x8xf32>
    tpu.vector_store %arg16[%c0_24, %c0_25, %c8], %75 {strides = array<i32>} : memref<2x8x32xf32, #tpu.memory_space<vmem>>, vector<2x8x8xf32>,
    %77 = vector.extract_strided_slice %72 {offsets = [0, 16, 0], sizes = [2, 8, 8], strides = [1, 1, 1]} : vector<2x32x8xf32> to vector<2x8x8xf32>
    %c0_26 = arith.constant 0 : index
    %c0_27 = arith.constant 0 : index
    %c16 = arith.constant 16 : index
    %78 = vector.load %arg16[%c0_26, %c0_27, %c16] : memref<2x8x32xf32, #tpu.memory_space<vmem>>, vector<2x8x8xf32>
    tpu.vector_store %arg16[%c0_26, %c0_27, %c16], %77 {strides = array<i32>} : memref<2x8x32xf32, #tpu.memory_space<vmem>>, vector<2x8x8xf32>,
    %79 = vector.extract_strided_slice %72 {offsets = [0, 24, 0], sizes = [2, 8, 8], strides = [1, 1, 1]} : vector<2x32x8xf32> to vector<2x8x8xf32>
    %c0_28 = arith.constant 0 : index
    %c0_29 = arith.constant 0 : index
    %c24 = arith.constant 24 : index
    %80 = vector.load %arg16[%c0_28, %c0_29, %c24] : memref<2x8x32xf32, #tpu.memory_space<vmem>>, vector<2x8x8xf32>
    tpu.vector_store %arg16[%c0_28, %c0_29, %c24], %79 {strides = array<i32>} : memref<2x8x32xf32, #tpu.memory_space<vmem>>, vector<2x8x8xf32>,
    %c0_30 = arith.constant 0 : index
    %c0_31 = arith.constant 0 : index
    %c0_32 = arith.constant 0 : index
    %81 = vector.load %arg16[%c0_30, %c0_31, %c0_32] : memref<2x8x32xf32, #tpu.memory_space<vmem>>, vector<2x8x32xf32>
    %82 = vector.shape_cast %81 : vector<2x8x32xf32> to vector<16x32xf32>
    %83 = arith.truncf %82 : vector<16x32xf32> to vector<16x32xbf16>
    %c0_33 = arith.constant 0 : index
    %c0_34 = arith.constant 0 : index
    %84 = vector.load %arg7[%c0_33, %c0_34] : memref<32x32xbf16, #tpu.memory_space<vmem>>, vector<32x32xbf16>
    %cst_35 = arith.constant dense<0.000000e+00> : vector<16x32xf32>
    %85 = tpu.matmul %83, %84, %cst_35 {dimension_numbers = #tpu.dot_dimension_numbers<[1], [0], [0], [1], [0, 0, 1, 1], [], []>} : vector<16x32xbf16>, vector<32x32xbf16>, vector<16x32xf32> -> vector<16x32xf32>
    %c0_36 = arith.constant 0 : index
    %c0_37 = arith.constant 0 : index
    %86 = vector.load %arg8[%c0_36, %c0_37] : memref<1x32xf32, #tpu.memory_space<vmem>>, vector<1x32xf32>
    %87 = vector.broadcast %86 : vector<1x32xf32> to vector<16x32xf32>
    %88 = arith.addf %85, %87 : vector<16x32xf32>
    %89 = arith.addf %1, %88 : vector<16x32xf32>
    %cst_38 = arith.constant dense<0.000000e+00> : vector<16xf32>
    %90 = vector.multi_reduction <add>, %89, %cst_38 [1] : vector<16x32xf32> to vector<16xf32>
    %91 = vector.shape_cast %90 : vector<16xf32> to vector<16x1xf32>
    %cst_39 = arith.constant 3.200000e+01 : f32
    %92 = vector.broadcast %cst_39 : f32 to vector<16x1xf32>
    %93 = arith.divf %91, %92 : vector<16x1xf32>
    %94 = vector.broadcast %93 : vector<16x1xf32> to vector<16x32xf32>
    %95 = arith.subf %89, %94 : vector<16x32xf32>
    %96 = arith.mulf %95, %95 : vector<16x32xf32>
    %cst_40 = arith.constant dense<0.000000e+00> : vector<16xf32>
    %97 = vector.multi_reduction <add>, %96, %cst_40 [1] : vector<16x32xf32> to vector<16xf32>
    %98 = vector.shape_cast %97 : vector<16xf32> to vector<16x1xf32>
    %cst_41 = arith.constant 3.200000e+01 : f32
    %99 = vector.broadcast %cst_41 : f32 to vector<16x1xf32>
    %100 = arith.divf %98, %99 : vector<16x1xf32>
    %101 = vector.broadcast %93 : vector<16x1xf32> to vector<16x32xf32>
    %102 = arith.subf %89, %101 : vector<16x32xf32>
    %cst_42 = arith.constant 9.99999974E-6 : f32
    %103 = vector.broadcast %cst_42 : f32 to vector<16x1xf32>
    %104 = arith.addf %100, %103 : vector<16x1xf32>
    %105 = math.rsqrt %104 : vector<16x1xf32>
    %106 = vector.broadcast %105 : vector<16x1xf32> to vector<16x32xf32>
    %107 = arith.mulf %102, %106 : vector<16x32xf32>
    %c0_43 = arith.constant 0 : index
    %c0_44 = arith.constant 0 : index
    %108 = vector.load %arg9[%c0_43, %c0_44] : memref<1x32xf32, #tpu.memory_space<vmem>>, vector<1x32xf32>
    %109 = vector.broadcast %108 : vector<1x32xf32> to vector<16x32xf32>
    %110 = arith.mulf %107, %109 : vector<16x32xf32>
    %c0_45 = arith.constant 0 : index
    %c0_46 = arith.constant 0 : index
    %111 = vector.load %arg10[%c0_45, %c0_46] : memref<1x32xf32, #tpu.memory_space<vmem>>, vector<1x32xf32>
    %112 = vector.broadcast %111 : vector<1x32xf32> to vector<16x32xf32>
    %113 = arith.addf %110, %112 : vector<16x32xf32>
    %114 = arith.truncf %113 : vector<16x32xf32> to vector<16x32xbf16>
    %c0_47 = arith.constant 0 : index
    %c0_48 = arith.constant 0 : index
    %115 = vector.load %arg11[%c0_47, %c0_48] : memref<32x128xbf16, #tpu.memory_space<vmem>>, vector<32x128xbf16>
    %cst_49 = arith.constant dense<0.000000e+00> : vector<16x128xf32>
    %116 = tpu.matmul %114, %115, %cst_49 {dimension_numbers = #tpu.dot_dimension_numbers<[1], [0], [0], [1], [0, 0, 1, 1], [], []>} : vector<16x32xbf16>, vector<32x128xbf16>, vector<16x128xf32> -> vector<16x128xf32>
    %c0_50 = arith.constant 0 : index
    %c0_51 = arith.constant 0 : index
    %117 = vector.load %arg12[%c0_50, %c0_51] : memref<1x128xf32, #tpu.memory_space<vmem>>, vector<1x128xf32>
    %118 = vector.broadcast %117 : vector<1x128xf32> to vector<16x128xf32>
    %119 = arith.addf %116, %118 : vector<16x128xf32>
    %120 = arith.truncf %119 : vector<16x128xf32> to vector<16x128xbf16>
    %cst_52 = arith.constant 5.000000e-01 : bf16
    %121 = vector.broadcast %cst_52 : bf16 to vector<16x128xbf16>
    %122 = arith.mulf %121, %120 : vector<16x128xbf16>
    %cst_53 = arith.constant 4.467770e-02 : bf16
    %123 = vector.broadcast %cst_53 : bf16 to vector<16x128xbf16>
    %124 = arith.mulf %123, %120 : vector<16x128xbf16>
    %125 = arith.mulf %124, %120 : vector<16x128xbf16>
    %126 = arith.mulf %125, %120 : vector<16x128xbf16>
    %127 = arith.addf %120, %126 : vector<16x128xbf16>
    %cst_54 = arith.constant 7.968750e-01 : bf16
    %128 = vector.broadcast %cst_54 : bf16 to vector<16x128xbf16>
    %129 = arith.mulf %128, %127 : vector<16x128xbf16>
    %130 = math.tanh %129 : vector<16x128xbf16>
    %cst_55 = arith.constant 1.000000e+00 : bf16
    %131 = vector.broadcast %cst_55 : bf16 to vector<16x128xbf16>
    %132 = arith.addf %131, %130 : vector<16x128xbf16>
    %133 = arith.mulf %122, %132 : vector<16x128xbf16>
    %c0_56 = arith.constant 0 : index
    %c0_57 = arith.constant 0 : index
    %134 = vector.load %arg13[%c0_56, %c0_57] : memref<128x32xbf16, #tpu.memory_space<vmem>>, vector<128x32xbf16>
    %cst_58 = arith.constant dense<0.000000e+00> : vector<16x32xf32>
    %135 = tpu.matmul %133, %134, %cst_58 {dimension_numbers = #tpu.dot_dimension_numbers<[1], [0], [0], [1], [0, 0, 1, 1], [], []>} : vector<16x128xbf16>, vector<128x32xbf16>, vector<16x32xf32> -> vector<16x32xf32>
    %c0_59 = arith.constant 0 : index
    %c0_60 = arith.constant 0 : index
    %136 = vector.load %arg14[%c0_59, %c0_60] : memref<1x32xf32, #tpu.memory_space<vmem>>, vector<1x32xf32>
    %137 = vector.broadcast %136 : vector<1x32xf32> to vector<16x32xf32>
    %138 = arith.addf %135, %137 : vector<16x32xf32>
    %139 = arith.addf %89, %138 : vector<16x32xf32>
    %140 = vector.shape_cast %139 : vector<16x32xf32> to vector<2x8x32xf32>
    %c0_61 = arith.constant 0 : index
    %c0_62 = arith.constant 0 : index
    %c0_63 = arith.constant 0 : index
    %141 = vector.load %arg15[%c0_61, %c0_62, %c0_63] : memref<2x8x32xf32, #tpu.memory_space<vmem>>, vector<2x8x32xf32>
    tpu.vector_store %arg15[%c0_61, %c0_62, %c0_63], %140 {strides = array<i32>} : memref<2x8x32xf32, #tpu.memory_space<vmem>>, vector<2x8x32xf32>,
    return
  }
  func.func @transform_0(%arg0: i32) -> (i32, i32, i32) {
    %c0_i32 = arith.constant 0 : i32
    %c0_i32_0 = arith.constant 0 : i32
    %c0_i32_1 = arith.constant 0 : i32
    return %arg0, %c0_i32, %c0_i32_0 : i32, i32, i32
  }
  func.func @transform_1(%arg0: i32) -> (i32, i32) {
    %c0_i32 = arith.constant 0 : i32
    %c0_i32_0 = arith.constant 0 : i32
    %c0_i32_1 = arith.constant 0 : i32
    return %c0_i32, %c0_i32_0 : i32, i32
  }
  func.func @transform_2(%arg0: i32) -> (i32, i32) {
    %c0_i32 = arith.constant 0 : i32
    %c0_i32_0 = arith.constant 0 : i32
    %c0_i32_1 = arith.constant 0 : i32
    return %c0_i32, %c0_i32_0 : i32, i32
  }
  func.func @transform_3(%arg0: i32) -> (i32, i32) {
    %c0_i32 = arith.constant 0 : i32
    %c0_i32_0 = arith.constant 0 : i32
    %c0_i32_1 = arith.constant 0 : i32
    return %c0_i32, %c0_i32_0 : i32, i32
  }
  func.func @transform_4(%arg0: i32) -> (i32, i32) {
    %c0_i32 = arith.constant 0 : i32
    %c0_i32_0 = arith.constant 0 : i32
    %c0_i32_1 = arith.constant 0 : i32
    return %c0_i32, %c0_i32_0 : i32, i32
  }
  func.func @transform_5(%arg0: i32) -> (i32, i32) {
    %c0_i32 = arith.constant 0 : i32
    %c0_i32_0 = arith.constant 0 : i32
    %c0_i32_1 = arith.constant 0 : i32
    return %c0_i32, %c0_i32_0 : i32, i32
  }
  func.func @transform_6(%arg0: i32) -> (i32, i32) {
    %c0_i32 = arith.constant 0 : i32
    %c0_i32_0 = arith.constant 0 : i32
    %c0_i32_1 = arith.constant 0 : i32
    return %c0_i32, %c0_i32_0 : i32, i32
  }
  func.func @transform_7(%arg0: i32) -> (i32, i32) {
    %c0_i32 = arith.constant 0 : i32
    %c0_i32_0 = arith.constant 0 : i32
    %c0_i32_1 = arith.constant 0 : i32
    return %c0_i32, %c0_i32_0 : i32, i32
  }
  func.func @transform_8(%arg0: i32) -> (i32, i32) {
    %c0_i32 = arith.constant 0 : i32
    %c0_i32_0 = arith.constant 0 : i32
    %c0_i32_1 = arith.constant 0 : i32
    return %c0_i32, %c0_i32_0 : i32, i32
  }
  func.func @transform_9(%arg0: i32) -> (i32, i32) {
    %c0_i32 = arith.constant 0 : i32
    %c0_i32_0 = arith.constant 0 : i32
    %c0_i32_1 = arith.constant 0 : i32
    return %c0_i32, %c0_i32_0 : i32, i32
  }
  func.func @transform_10(%arg0: i32) -> (i32, i32) {
    %c0_i32 = arith.constant 0 : i32
    %c0_i32_0 = arith.constant 0 : i32
    %c0_i32_1 = arith.constant 0 : i32
    return %c0_i32, %c0_i32_0 : i32, i32
  }
  func.func @transform_11(%arg0: i32) -> (i32, i32) {
    %c0_i32 = arith.constant 0 : i32
    %c0_i32_0 = arith.constant 0 : i32
    %c0_i32_1 = arith.constant 0 : i32
    return %c0_i32, %c0_i32_0 : i32, i32
  }
  func.func @transform_12(%arg0: i32) -> (i32, i32) {
    %c0_i32 = arith.constant 0 : i32
    %c0_i32_0 = arith.constant 0 : i32
    %c0_i32_1 = arith.constant 0 : i32
    return %c0_i32, %c0_i32_0 : i32, i32
  }
  func.func @transform_13(%arg0: i32) -> (i32, i32) {
    %c0_i32 = arith.constant 0 : i32
    %c0_i32_0 = arith.constant 0 : i32
    %c0_i32_1 = arith.constant 0 : i32
    return %c0_i32, %c0_i32_0 : i32, i32
  }
  func.func @transform_14(%arg0: i32) -> (i32, i32, i32) {
    %c0_i32 = arith.constant 0 : i32
    %c0_i32_0 = arith.constant 0 : i32
    %c0_i32_1 = arith.constant 0 : i32
    return %arg0, %c0_i32, %c0_i32_0 : i32, i32, i32
  }
}

</mosaic_0001>

<bundles_post_ra>
// kernel: tpu_custom_call.1
= control target key start
LH: loop header
LB: loop body
LE: loop exit
PB: predicated region body
PF: predicated region fallthrough
CT: control target
= control target key end

     0   :  { %19 = vsyncpa [#allocation4], 0  ;;  %s1509_s0 = inlined_call_operand.hbm [shape: f32[2,8,32], index: 0, kind: input, shape index: {}, may-alias: {0,14}]   ;;  %s1510_s1 = inlined_call_operand.vmem [shape: f32[32,32], index: 1, kind: input, shape index: {}]   ;;  %s1511_s2 = inlined_call_operand.vmem [shape: f32[1,32], index: 2, kind: input, shape index: {}]   ;;  %s1512_s3 = inlined_call_operand.vmem [shape: f32[1,32], index: 3, kind: input, shape index: {}]   ;;  %s1513_s4 = inlined_call_operand.vmem [shape: bf16[32,96], index: 4, kind: input, shape index: {}]   ;;  %s1514_s5 = inlined_call_operand.vmem [shape: f32[1,96], index: 5, kind: input, shape index: {}]   ;;  %s1515_s6 = inlined_call_operand.vmem [shape: bf16[32,32], index: 6, kind: input, shape index: {}]   ;;  %s1516_s7 = inlined_call_operand.vmem [shape: f32[1,32], index: 7, kind: input, shape index: {}]   ;;  %s1517_s8 = inlined_call_operand.vmem [shape: f32[1,32], index: 8, kind: input, shape index: {}]   ;;  %s1518_s9 = inlined_call_operand.vmem [shape: f32[1,32], index: 9, kind: input, shape index: {}]   ;;  %s1519_s10 = inlined_call_operand.vmem [shape: bf16[32,128], index: 10, kind: input, shape index: {}]   ;;  %s1520_s11 = inlined_call_operand.vmem [shape: f32[1,128], index: 11, kind: input, shape index: {}]   ;;  %s1521_s12 = inlined_call_operand.vmem [shape: bf16[128,32], index: 12, kind: input, shape index: {}]   ;;  %s1522_s13 = inlined_call_operand.vmem [shape: f32[1,32], index: 13, kind: input, shape index: {}]   ;;  %s1523_s14 = inlined_call_operand.hbm [shape: f32[2,8,32], index: 14, kind: output, shape index: {}, may-alias: {0,14}]  }
   0x1   :  { %20 = vsyncpa [#allocation5], 0  ;;  %s1186_s29 = smov [#allocation3]   ;;  %s1138_s17 = scalar_lea.hbm %s1509_s0, 256 }
   0x2   :  { %s26_s30 = sshll.u32 %s1186_s29, 4  ;;  %p1139_p0 = scmp.ne.s32.totalorder %s1509_s0, %s1138_s17  ;;  %s27_s30 = int_to_ptr.vmem [resolvable:$true] %s26_s30 }
   0x3   :  { %p1142_p1 = scmp.lt.u32.totalorder %s1138_s17, %s1509_s0 }
   0x5   :  { %p1144_p2 = pnand %p1142_p1, %p1139_p0 }
   0x7   :  { %1147 = shalt.err (!%p1144_p2)
}
   0x8   :  { %s1148_s22 = scalar_lea.vmem %s27_s30, 256  ;;  %p1153_p4 = scmp.lt.s32.totalorder %s27_s30, %s27_s30 }
   0x9   :  { %p1149_p3 = scmp.ne.s32.totalorder %s27_s30, %s1148_s22  ;;  %p1154_p5 = scmp.lt.s32.totalorder %s1148_s22, %s1148_s22 }
   0xb   :  { %p1155_p6 = por %p1154_p5, %p1153_p4 }
   0xd   :  { %p1156_p7 = pnand %p1155_p6, %p1149_p3 }
   0xf   :  { %1159 = shalt.err (!%p1156_p7)
}
  0x10   :  { %s1187_s23 = smov 128   ;;  %s1188_s24 = smov 8  }
  0x11   :  { %32 = dma.hbm_to_vmem [thread:$0]  %s1509_s0, 256, %s27_s30, [#allocation4], %s1187_s23, %s1187_s23, %s1188_s24  }
  0x12   :  { %1182 = dma.done.wait [#allocation4], 256  }
  0x13   :  { %1183 = vsyncadd [#allocation4], 4294967040  ;;  %vm69_vm0 = vcmask 261120   ;;  %v1289_v0 = vld [vmem:[#allocation3] sm:$0xff]  ;;  %v1291_v1 = vld [vmem:[#allocation3 + $0x8] sm:$0xff]  ;;  %v1189_v15 = vmov 0.0  }
  0x14   :  { %v70_v2 = vsel %vm69_vm0, %v1289_v0, 0.0  ;;  %v73_v3 = vsel %vm69_vm0, %v1291_v1, 0.0  ;;  %v1082_v14 = vld [vmem:[%s1513_s4] sm:$0xff]   ;;  %989 = vmatprep.subr.bf16.mxu0 %v1189_v15  ;;  %v1083_v16 = vld [vmem:[%s1513_s4 + $0x8] sm:$0xff]   ;;  %vm1190_vm1 = vmmov 0   ;;  %s1192_s19 = smov 120  }
  0x15   :  { %71 = vadd.xlane.f32.xlu0 %v70_v2  ;;  %990 = vmatpush3.bf16.msra.mxu0 %v1082_v14  ;;  %v922_v25 = vld [vmem:[%s1511_s2] ss:$0 sm:$0xff]  ;;  %s1191_s2 = smov 112   ;;  %vm217_vm2 = vcmask 64512   ;;  %v209_v59 = vld [vmem:[%s1510_s1 + $0x10] sm:$0xff]  ;;  %v210_v62 = vld [vmem:[%s1510_s1 + $0x18] sm:$0xff] }
  0x16   :  { %993 = vmatprep.mubr.msk.bf16.mxu0 %vm1190_vm1, %v1189_v15  ;;  %991 = vmatprep.subr.bf16.mxu0 %v1189_v15  ;;  %v923_v29 = vld [vmem:[%s1512_s3] ss:$0 sm:$0xff]  ;;  %s1193_s3 = smov 104   ;;  %s1196_s29 = smov 16   ;;  %vm570_vm3 = vcmask 130112   ;;  %vm581_vm4 = vcmask 195712  }
  0x17   :  { %v924_v34 = vld [vmem:[%s1514_s5] ss:$0 sm:$0xff]  ;;  %s1194_s5 = smov 96   ;;  %s1197_s30 = smov 24   ;;  %vm592_vm5 = vcmask 261312  }
  0x18   :  { %v207_v61 = vld [vmem:[%s1510_s1] sm:$0xff] }
  0x19   :  { %74 = vadd.xlane.f32.xlu0 %v73_v3  ;;  %992 = vmatpush3.bf16.msra.mxu0 %v1083_v16 }
  0xa2   :  { %v72_v4 = vpop.xlane.xlu0 %71 }
  0xa3   :  { %v77_v5 = vmul.f32 0.03125, %v72_v4  ;;  %v208_v4 = vld [vmem:[%s1510_s1 + $0x8] sm:$0xff]  ;;  %s1195_s1 = smov 64  }
  0xa5   :  { %v79_v6 = vsub.f32 %v1289_v0, %v77_v5 }
  0xa6   :  { %v75_v7 = vpop.xlane.xlu0 %74 }
  0xa7   :  { %v78_v8 = vmul.f32 0.03125, %v75_v7  ;;  %v81_v9 = vmul.f32 %v79_v6, %v79_v6 }
  0xa9   :  { %v80_v10 = vsub.f32 %v1291_v1, %v78_v8  ;;  %v83_v11 = vsel %vm69_vm0, %v81_v9, 0.0 }
  0xaa   :  { %84 = vadd.xlane.f32.xlu1 %v83_v11 }
  0xab   :  { %v82_v12 = vmul.f32 %v80_v10, %v80_v10 }
  0xad   :  { %v86_v13 = vsel %vm69_vm0, %v82_v12, 0.0 }
  0xae   :  { %87 = vadd.xlane.f32.xlu1 %v86_v13 }
 0x137   :  { %v85_v17 = vpop.xlane.xlu1 %84 }
 0x138   :  { %v89_v18 = vmul.f32 0.03125, %v85_v17 }
 0x13a   :  { %v91_v19 = vadd.f32 1e-05, %v89_v18 }
 0x13b   :  { %v88_v20 = vpop.xlane.xlu1 %87 }
 0x13c   :  { %1096 = vrsqrt.f32 %v91_v19  ;;  %v90_v21 = vmul.f32 0.03125, %v88_v20 }
 0x13e   :  { %v92_v22 = vadd.f32 1e-05, %v90_v21 }
 0x140   :  { %1098 = vrsqrt.f32 %v92_v22 }
 0x146   :  { %v1097_v23 = vpop.eup %1096 }
 0x147   :  { %v95_v24 = vmul.f32 %v1097_v23, %v79_v6 }
 0x149   :  { %v104_v28 = vmul.f32 %v922_v25, %v95_v24 }
 0x14a   :  { %v1099_v26 = vpop.eup %1098 }
 0x14b   :  { %v96_v27 = vmul.f32 %v1099_v26, %v80_v10  ;;  %v113_v31 = vadd.f32 %v923_v29, %v104_v28 }
 0x14d   :  { %v105_v30 = vmul.f32 %v922_v25, %v96_v27 }
 0x14f   :  { %v114_v32 = vadd.f32 %v923_v29, %v105_v30 }
 0x151   :  { %v115_v33 = vpack.c.bf16 %v114_v32, %v113_v31 }
 0x153   :  { %994 = vmatmul.mubr.msk.bf16.vlgmr.msra.gmra.mrb[0].mxu0 %vm69_vm0, %v115_v33 }
 0x226   :  { %v176_v35 = vpop.f32.mrb[0].mxu0 }
 0x227   :  { %v177_v36 = vadd.f32 %v924_v34, %v176_v35  ;;  %v995_v37 = vpop.f32.mrb[1].mxu0 }
 0x228   :  { %v179_v38 = vpop.f32.mrb[2].mxu0 }
 0x229   :  { %191 = vrot.lane.b32.xlu1 %v177_v36, %s1191_s2  ;;  %185 = vrot.lane.b32.xlu0 %v177_v36, %s1192_s19  ;;  %v996_v39 = vpop.f32.mrb[3].mxu0  ;;  %v180_v40 = vadd.f32 %v924_v34, %v179_v38 }
 0x22d   :  { %197 = vrot.lane.b32.xlu1 %v177_v36, %s1193_s3  ;;  %193 = vrot.lane.b32.xlu0 %v180_v40, %s1191_s2  ;;  %s1198_s2 = smov [#allocation6]  }
 0x231   :  { %187 = vrot.lane.b32.xlu1 %v180_v40, %s1192_s19  ;;  %s910_s19 = sshll.u32 %s1198_s2, 4  ;;  %s911_s19 = int_to_ptr.vmem [resolvable:$true] %s910_s19 }
 0x232   :  { %p1165_p9 = scmp.lt.s32.totalorder %s911_s19, %s911_s19 }
 0x235   :  { %199 = vrot.lane.b32.xlu1 %v180_v40, %s1193_s3  ;;  %s1160_s3 = scalar_lea.vmem %s911_s19, 256 }
 0x236   :  { %p1161_p8 = scmp.ne.s32.totalorder %s911_s19, %s1160_s3  ;;  %p1166_p10 = scmp.lt.s32.totalorder %s1160_s3, %s1160_s3 }
 0x238   :  { %p1167_p11 = por %p1166_p10, %p1165_p9 }
 0x23a   :  { %p1168_p12 = pnand %p1167_p11, %p1161_p8 }
 0x29b   :  { %v192_v41 = vpop.permute.xlu1 %191  ;;  %v186_v42 = vpop.permute.xlu0 %185 }
 0x29c   :  { %v1321_v43 = vpack.c.bf16 %v186_v42, %v177_v36 }
 0x29e   :  { %1001 = vmatprep.mubr.msk.bf16.mxu0 %vm217_vm2, %v1321_v43  ;;  %213 = vrot.lane.b32.xlu0 %v1321_v43, %s1194_s5 }
 0x29f   :  { %v198_v44 = vpop.permute.xlu1 %197  ;;  %v194_v48 = vpop.permute.xlu0 %193 }
 0x2a0   :  { %v1326_v45 = vpack.c.bf16 %v198_v44, %v192_v41 }
 0x2a2   :  { %215 = vrot.lane.b32.xlu1 %v1326_v45, %s1194_s5 }
 0x2a3   :  { %v188_v46 = vpop.permute.xlu1 %187 }
 0x2a4   :  { %v1329_v47 = vpack.c.bf16 %v188_v46, %v180_v40 }
 0x2a6   :  { %281 = vrot.lane.b32.xlu0 %v1329_v47, %s1194_s5 }
 0x2a7   :  { %v200_v49 = vpop.permute.xlu1 %199 }
 0x2a8   :  { %v1332_v50 = vpack.c.bf16 %v200_v49, %v194_v48 }
 0x2aa   :  { %283 = vrot.lane.b32.xlu1 %v1332_v50, %s1194_s5 }
 0x310   :  { %v214_v51 = vpop.permute.xlu0 %213 }
 0x311   :  { %v225_v52 = vsel %vm217_vm2, %v214_v51, 0  ;;  %1065 = vmatprep.subr.msk.bf16.mxu0 %vm217_vm2, %v214_v51 }
 0x312   :  { %998 = vmatpush3.bf16.xpose.msra.mxu0 %v225_v52 }
 0x314   :  { %v216_v53 = vpop.permute.xlu1 %215 }
 0x315   :  { %1066 = vmatprep.subr.msk.bf16.mxu0 %vm217_vm2, %v216_v53  ;;  %v228_v54 = vsel %vm217_vm2, %v216_v53, 0 }
 0x318   :  { %v282_v55 = vpop.permute.xlu0 %281 }
 0x319   :  { %v292_v56 = vsel %vm217_vm2, %v282_v55, 0 }
 0x31a   :  { %1000 = vmatpush3.bf16.xpose.msra.mxu0 %v228_v54 }
 0x31b   :  { %1067 = vmatprep.subr.msk.bf16.mxu0 %vm217_vm2, %v282_v55 }
 0x31c   :  { %v284_v57 = vpop.permute.xlu1 %283 }
 0x31d   :  { %v295_v58 = vsel %vm217_vm2, %v284_v57, 0 }
 0x321   :  { %1002 = vmatmul.mubr.msk.bf16.vlgmr.msra.gmra.mrb[4].mxu0 %vm217_vm2, %v1326_v45 }
 0x322   :  { %1006 = vmatpush3.bf16.xpose.msra.mxu0 %v292_v56  ;;  %1009 = vmatprep.mubr.msk.bf16.mxu0 %vm217_vm2, %v1329_v47 }
 0x323   :  { %1068 = vmatprep.subr.msk.bf16.mxu0 %vm217_vm2, %v284_v57 }
 0x32a   :  { %1008 = vmatpush3.bf16.xpose.msra.mxu0 %v295_v58 }
 0x331   :  { %1010 = vmatmul.mubr.msk.bf16.vlgmr.msra.gmra.mrb[8].mxu0 %vm217_vm2, %v1332_v50 }
 0x3f4   :  { %v1003_v60 = vpop.f32.mrb[4].mxu0 }
 0x3f5   :  { %v273_v63 = vadd.f32 %v1003_v60, %v209_v59  ;;  %v264_v2 = vpop.f32.mrb[5].mxu0 }
 0x3f6   :  { %v1004_v3 = vpop.f32.mrb[6].mxu0  ;;  %v265_v5 = vadd.f32 %v264_v2, %v207_v61 }
 0x3f7   :  { %v276_v6 = vadd.f32 %v1004_v3, %v210_v62  ;;  %v267_v7 = vpop.f32.mrb[7].mxu0  ;;  %v352_v8 = vsel %vm69_vm0, %v273_v63, -inf }
 0x3f8   :  { %353 = vmax.xlane.f32.xlu0 %v352_v8  ;;  %v268_v9 = vadd.f32 %v267_v7, %v208_v4  ;;  %v346_v11 = vsel %vm69_vm0, %v265_v5, -inf }
 0x3f9   :  { %v355_v10 = vsel %vm69_vm0, %v276_v6, -inf }
 0x3fa   :  { %356 = vmax.xlane.f32.xlu1 %v355_v10  ;;  %v349_v12 = vsel %vm69_vm0, %v268_v9, -inf }
 0x3fc   :  { %347 = vmax.xlane.f32.xlu0 %v346_v11 }
 0x3fe   :  { %350 = vmax.xlane.f32.xlu1 %v349_v12 }
 0x404   :  { %v1011_v13 = vpop.f32.mrb[8].mxu0 }
 0x405   :  { %v331_v14 = vpop.f32.mrb[9].mxu0  ;;  %v340_v23 = vadd.f32 %v1011_v13, %v209_v59 }
 0x406   :  { %v332_v16 = vadd.f32 %v331_v14, %v207_v61  ;;  %v1012_v17 = vpop.f32.mrb[10].mxu0 }
 0x407   :  { %v343_v18 = vadd.f32 %v1012_v17, %v210_v62  ;;  %v334_v19 = vpop.f32.mrb[11].mxu0  ;;  %v364_v25 = vsel %vm69_vm0, %v340_v23, -inf }
 0x408   :  { %v335_v20 = vadd.f32 %v334_v19, %v208_v4  ;;  %v358_v21 = vsel %vm69_vm0, %v332_v16, -inf }
 0x409   :  { %359 = vmax.xlane.f32.xlu0 %v358_v21  ;;  %v367_v22 = vsel %vm69_vm0, %v343_v18, -inf }
 0x40a   :  { %368 = vmax.xlane.f32.xlu1 %v367_v22  ;;  %v361_v24 = vsel %vm69_vm0, %v335_v20, -inf }
 0x40d   :  { %362 = vmax.xlane.f32.xlu0 %v361_v24 }
 0x411   :  { %365 = vmax.xlane.f32.xlu0 %v364_v25 }
 0x485   :  { %v354_v26 = vpop.xlane.xlu0 %353 }
 0x486   :  { %v372_v27 = vsub.f32 %v273_v63, %v354_v26 }
 0x487   :  { %v357_v28 = vpop.xlane.xlu1 %356 }
 0x488   :  { %v382_v29 = vmul.f32 1.442695, %v372_v27  ;;  %v373_v30 = vsub.f32 %v276_v6, %v357_v28 }
 0x489   :  { %v348_v31 = vpop.xlane.xlu0 %347 }
 0x48a   :  { %1100 = vpow2.f32 %v382_v29  ;;  %v384_v32 = vmul.f32 1.442695, %v373_v30  ;;  %v370_v33 = vsub.f32 %v265_v5, %v348_v31 }
 0x48b   :  { %v351_v34 = vpop.xlane.xlu1 %350 }
 0x48c   :  { %1102 = vpow2.f32 %v384_v32  ;;  %v378_v35 = vmul.f32 1.442695, %v370_v33  ;;  %v371_v36 = vsub.f32 %v268_v9, %v351_v34 }
 0x48e   :  { %1104 = vpow2.f32 %v378_v35  ;;  %v380_v37 = vmul.f32 1.442695, %v371_v36 }
 0x490   :  { %1106 = vpow2.f32 %v380_v37 }
 0x494   :  { %v1369_v38 = vpop.eup %1100 }
 0x495   :  { %v400_v39 = vsel %vm69_vm0, %v1369_v38, 0.0 }
 0x496   :  { %v1373_v40 = vpop.eup %1102  ;;  %401 = vadd.xlane.f32.xlu0 %v400_v39  ;;  %v360_v41 = vpop.xlane.xlu0 %359 }
 0x497   :  { %v403_v42 = vsel %vm69_vm0, %v1373_v40, 0.0  ;;  %v374_v52 = vsub.f32 %v332_v16, %v360_v41  ;;  %v369_v61 = vpop.xlane.xlu1 %368  ;;  %v1084_v41 = vld [vmem:[%s1515_s6] sm:$0xff]  }
 0x498   :  { %v1105_v44 = vpop.eup %1104  ;;  %404 = vadd.xlane.f32.xlu1 %v403_v42  ;;  %v377_v62 = vsub.f32 %v343_v18, %v369_v61  ;;  %v1085_v42 = vld [vmem:[%s1515_s6 + $0x8] sm:$0xff]  }
 0x499   :  { %v394_v46 = vsel %vm69_vm0, %v1105_v44, 0.0  ;;  %v386_v55 = vmul.f32 1.442695, %v374_v52 }
 0x49a   :  { %v1107_v48 = vpop.eup %1106  ;;  %395 = vadd.xlane.f32.xlu0 %v394_v46  ;;  %v363_v49 = vpop.xlane.xlu0 %362  ;;  %v392_v63 = vmul.f32 1.442695, %v377_v62 }
 0x49b   :  { %v397_v51 = vsel %vm69_vm0, %v1107_v48, 0.0  ;;  %v375_v2 = vsub.f32 %v335_v20, %v363_v49 }
 0x49c   :  { %398 = vadd.xlane.f32.xlu1 %v397_v51 }
 0x49d   :  { %v388_v3 = vmul.f32 1.442695, %v375_v2 }
 0x49e   :  { %v366_v53 = vpop.xlane.xlu0 %365 }
 0x49f   :  { %v376_v54 = vsub.f32 %v340_v23, %v366_v53 }
 0x4a1   :  { %v390_v56 = vmul.f32 1.442695, %v376_v54 }
 0x4a3   :  { %1108 = vpow2.f32 %v390_v56 }
 0x4a4   :  { %1110 = vpow2.f32 %v386_v55 }
 0x4a5   :  { %1112 = vpow2.f32 %v392_v63 }
 0x4a6   :  { %1114 = vpow2.f32 %v388_v3 }
 0x4ad   :  { %v1379_v57 = vpop.eup %1108  ;;  %499 = vrot.lane.b32.xlu1 %v1329_v47, %s1195_s1 }
 0x4ae   :  { %v412_v58 = vsel %vm69_vm0, %v1379_v57, 0.0  ;;  %v1384_v59 = vpop.eup %1110 }
 0x4af   :  { %413 = vadd.xlane.f32.xlu0 %v412_v58  ;;  %v406_v60 = vsel %vm69_vm0, %v1384_v59, 0.0  ;;  %v1113_v47 = vpop.eup %1112 }
 0x4b0   :  { %v415_v4 = vsel %vm69_vm0, %v1113_v47, 0.0  ;;  %v1115_v5 = vpop.eup %1114 }
 0x4b1   :  { %440 = vrot.lane.b32.xlu1 %v1326_v45, %s1195_s1  ;;  %v409_v45 = vsel %vm69_vm0, %v1115_v5, 0.0 }
 0x4b3   :  { %407 = vadd.xlane.f32.xlu0 %v406_v60  ;;  %v936_v60 = vld [vmem:[%s1516_s7] ss:$0 sm:$0xff] }
 0x4c9   :  { %438 = vrot.lane.b32.xlu0 %v1321_v43, %s1195_s1 }
 0x4d5   :  { %416 = vadd.xlane.f32.xlu1 %v415_v4 }
 0x4d9   :  { %410 = vadd.xlane.f32.xlu1 %v409_v45 }
 0x4ea   :  { %501 = vrot.lane.b32.xlu1 %v1332_v50, %s1195_s1 }
 0x523   :  { %v402_v6 = vpop.xlane.xlu0 %401 }
 0x525   :  { %v405_v7 = vpop.xlane.xlu1 %404 }
 0x527   :  { %v396_v8 = vpop.xlane.xlu0 %395 }
 0x528   :  { %1116 = vrcp.f32 %v396_v8 }
 0x529   :  { %v399_v9 = vpop.xlane.xlu1 %398 }
 0x52a   :  { %1118 = vrcp.f32 %v399_v9 }
 0x52b   :  { %1120 = vrcp.f32 %v405_v7 }
 0x52c   :  { %1122 = vrcp.f32 %v402_v6 }
 0x52d   :  { %v500_v10 = vpop.permute.xlu1 %499 }
 0x52e   :  { %1021 = vmatprep.subr.bf16.mxu0 %v500_v10 }
 0x52f   :  { %1022 = vmatpush3.bf16.msra.mxu0 %v500_v10 }
 0x531   :  { %v441_v20 = vpop.permute.xlu1 %440 }
 0x532   :  { %v1117_v43 = vpop.eup %1116 }
 0x533   :  { %v426_v12 = vmul.f32 %v1117_v43, %v1105_v44 }
 0x534   :  { %v1119_v11 = vpop.eup %1118 }
 0x535   :  { %v427_v13 = vmul.f32 %v1119_v11, %v1107_v48  ;;  %v1121_v17 = vpop.eup %1120 }
 0x536   :  { %v1123_v19 = vpop.eup %1122  ;;  %v429_v21 = vmul.f32 %v1121_v17, %v1373_v40 }
 0x537   :  { %v434_v14 = vpack.c.bf16 %v427_v13, %v426_v12  ;;  %v428_v22 = vmul.f32 %v1123_v19, %v1369_v38 }
 0x539   :  { %1017 = vmatprep.mubr.msk.bf16.mxu1 %vm69_vm0, %v434_v14  ;;  %v435_v23 = vpack.c.bf16 %v429_v21, %v428_v22  ;;  %v1086_v14 = vld [vmem:[%s1519_s10] sm:$0xff]  }
 0x53c   :  { %v414_v16 = vpop.xlane.xlu0 %413 }
 0x540   :  { %v408_v50 = vpop.xlane.xlu0 %407 }
 0x544   :  { %v439_v18 = vpop.permute.xlu0 %438 }
 0x545   :  { %1013 = vmatprep.subr.bf16.mxu1 %v439_v18 }
 0x546   :  { %1014 = vmatpush3.bf16.msra.mxu1 %v439_v18 }
 0x547   :  { %1015 = vmatprep.subr.bf16.mxu1 %v441_v20 }
 0x54a   :  { %1016 = vmatpush3.bf16.msra.mxu1 %v441_v20 }
 0x54b   :  { %1029 = vmatprep.subr.bf16.mxu1 %v1189_v15 }
 0x54d   :  { %1018 = vmatmul.mubr.msk.bf16.vlgmr.msra.gmra.mrb[0].mxu1 %vm69_vm0, %v435_v23 }
 0x54e   :  { %1033 = vmatprep.mubr.msk.bf16.mxu1 %vm1190_vm1, %v1189_v15  ;;  %1030 = vmatpush3.bf16.msra.mxu1 %v1084_v41  ;;  %v942_v41 = vld [vmem:[%s1520_s11] ss:$0 sm:$0xff] }
 0x54f   :  { %1031 = vmatprep.subr.bf16.mxu1 %v1189_v15 }
 0x552   :  { %1032 = vmatpush3.bf16.msra.mxu1 %v1085_v42 }
 0x553   :  { %1045 = vmatprep.subr.bf16.mxu1 %v1189_v15 }
 0x562   :  { %v417_v24 = vpop.xlane.xlu1 %416 }
 0x563   :  { %1124 = vrcp.f32 %v417_v24  ;;  %v940_v24 = vld [vmem:[%s1517_s8] ss:$0 sm:$0xff] }
 0x564   :  { %1126 = vrcp.f32 %v408_v50 }
 0x565   :  { %1128 = vrcp.f32 %v414_v16  ;;  %v1087_v16 = vld [vmem:[%s1519_s10 + $0x8] sm:$0xff]  }
 0x566   :  { %v411_v25 = vpop.xlane.xlu1 %410 }
 0x567   :  { %1130 = vrcp.f32 %v411_v25 }
 0x56a   :  { %v502_v26 = vpop.permute.xlu1 %501 }
 0x56b   :  { %1023 = vmatprep.subr.bf16.mxu0 %v502_v26 }
 0x56c   :  { %1024 = vmatpush3.bf16.msra.mxu0 %v502_v26 }
 0x56d   :  { %1037 = vmatprep.subr.bf16.mxu0 %v1189_v15  ;;  %v1125_v27 = vpop.eup %1124 }
 0x56e   :  { %v1127_v28 = vpop.eup %1126  ;;  %v433_v31 = vmul.f32 %v1125_v27, %v1113_v47 }
 0x56f   :  { %v1129_v29 = vpop.eup %1128  ;;  %v430_v32 = vmul.f32 %v1127_v28, %v1384_v59  ;;  %v941_v28 = vld [vmem:[%s1518_s9] ss:$0 sm:$0xff] }
 0x570   :  { %v432_v34 = vmul.f32 %v1129_v29, %v1379_v57 }
 0x571   :  { %v1131_v30 = vpop.eup %1130 }
 0x572   :  { %v431_v33 = vmul.f32 %v1131_v30, %v1115_v5  ;;  %v437_v36 = vpack.c.bf16 %v433_v31, %v432_v34  ;;  %v1089_v34 = vld [vmem:[%s1521_s12 + $0x8] sm:$0xff]  }
 0x574   :  { %v436_v35 = vpack.c.bf16 %v431_v33, %v430_v32  ;;  %v1088_v33 = vld [vmem:[%s1521_s12] sm:$0xff]  }
 0x576   :  { %1025 = vmatprep.mubr.msk.bf16.mxu0 %vm69_vm0, %v436_v35  ;;  %v1090_v35 = vld [vmem:[%s1521_s12 + $0x10] sm:$0xff]  }
 0x577   :  { %1026 = vmatmul.mubr.msk.bf16.vlgmr.msra.gmra.mrb[12].mxu0 %vm69_vm0, %v437_v36  ;;  %v1091_v36 = vld [vmem:[%s1521_s12 + $0x18] sm:$0xff]  }
 0x578   :  { %1041 = vmatprep.mubr.msk.bf16.mxu0 %vm1190_vm1, %v1189_v15  ;;  %1038 = vmatpush3.bf16.msra.mxu0 %v1086_v14 }
 0x579   :  { %1039 = vmatprep.subr.bf16.mxu0 %v1189_v15 }
 0x57c   :  { %1040 = vmatpush3.bf16.msra.mxu0 %v1087_v16 }
 0x620   :  { %v1019_v37 = vpop.f32.mrb[0].mxu1 }
 0x621   :  { %575 = vrot.lane.b32.xlu0 %v1019_v37, %s1196_s29  ;;  %v484_v38 = vpop.f32.mrb[1].mxu1  ;;  %v1092_v37 = vld [vmem:[%s1521_s12 + $0x20] sm:$0xff]  }
 0x622   :  { %560 = vst.msk [vmem:[#allocation2] sm:$0xff] %vm217_vm2, %v484_v38  ;;  %v1020_v39 = vpop.f32.mrb[2].mxu1  ;;  %v1093_v38 = vld [vmem:[%s1521_s12 + $0x28] sm:$0xff]  }
 0x623   :  { %v487_v40 = vpop.f32.mrb[3].mxu1 }
 0x625   :  { %564 = vrot.lane.b32.xlu0 %v487_v40, %s1188_s24  ;;  %v1095_v40 = vld [vmem:[%s1521_s12 + $0x38] sm:$0xff]  }
 0x629   :  { %586 = vrot.lane.b32.xlu0 %v1020_v39, %s1197_s30  ;;  %v1094_v39 = vld [vmem:[%s1521_s12 + $0x30] sm:$0xff]  }
 0x64a   :  { %v1027_v44 = vpop.f32.mrb[12].mxu0 }
 0x64b   :  { %577 = vrot.lane.b32.xlu1 %v1027_v44, %s1196_s29  ;;  %v545_v46 = vpop.f32.mrb[13].mxu0 }
 0x64c   :  { %561 = vst.msk [vmem:[#allocation2 + $0x8] sm:$0xff] %vm217_vm2, %v545_v46  ;;  %v1028_v48 = vpop.f32.mrb[14].mxu0 }
 0x64d   :  { %v548_v49 = vpop.f32.mrb[15].mxu0 }
 0x64f   :  { %566 = vrot.lane.b32.xlu1 %v548_v49, %s1188_s24 }
 0x653   :  { %588 = vrot.lane.b32.xlu1 %v1028_v48, %s1197_s30 }
 0x693   :  { %v576_v51 = vpop.permute.xlu0 %575 }
 0x697   :  { %v565_v52 = vpop.permute.xlu0 %564 }
 0x698   :  { %571 = vst.msk [vmem:[#allocation2] sm:$0xff] %vm570_vm3, %v565_v52 }
 0x699   :  { %582 = vst.msk [vmem:[#allocation2] sm:$0xff] %vm581_vm4, %v576_v51 }
 0x69b   :  { %v587_v53 = vpop.permute.xlu0 %586 }
 0x69c   :  { %593 = vst.msk [vmem:[#allocation2] sm:$0xff] %vm592_vm5, %v587_v53 }
 0x6a3   :  { %v595_v57 = vld [vmem:[#allocation2] sm:$0xff] }
 0x6bd   :  { %v578_v54 = vpop.permute.xlu1 %577 }
 0x6c1   :  { %v567_v55 = vpop.permute.xlu1 %566 }
 0x6c2   :  { %572 = vst.msk [vmem:[#allocation2 + $0x8] sm:$0xff] %vm570_vm3, %v567_v55 }
 0x6c3   :  { %583 = vst.msk [vmem:[#allocation2 + $0x8] sm:$0xff] %vm581_vm4, %v578_v54 }
 0x6c5   :  { %v589_v56 = vpop.permute.xlu1 %588 }
 0x6c6   :  { %594 = vst.msk [vmem:[#allocation2 + $0x8] sm:$0xff] %vm592_vm5, %v589_v56 }
 0x6cd   :  { %v596_v58 = vld [vmem:[#allocation2 + $0x8] sm:$0xff] }
 0x6ce   :  { %v597_v59 = vpack.c.bf16 %v596_v58, %v595_v57 }
 0x6d0   :  { %1034 = vmatmul.mubr.msk.bf16.vlgmr.msra.gmra.mrb[4].mxu1 %vm69_vm0, %v597_v59 }
 0x6d1   :  { %1061 = vmatprep.mubr.msk.bf16.mxu1 %vm1190_vm1, %v1189_v15  ;;  %1046 = vmatpush3.bf16.msra.mxu1 %v1088_v33 }
 0x6d2   :  { %1047 = vmatprep.subr.bf16.mxu1 %v1189_v15 }
 0x6d5   :  { %1048 = vmatpush3.bf16.msra.mxu1 %v1089_v34 }
 0x6d6   :  { %1049 = vmatprep.subr.bf16.mxu1 %v1189_v15 }
 0x6d9   :  { %1050 = vmatpush3.bf16.msra.mxu1 %v1090_v35 }
 0x6da   :  { %1051 = vmatprep.subr.bf16.mxu1 %v1189_v15 }
 0x6dd   :  { %1052 = vmatpush3.bf16.msra.mxu1 %v1091_v36 }
 0x6de   :  { %1053 = vmatprep.subr.bf16.mxu1 %v1189_v15 }
 0x6e1   :  { %1054 = vmatpush3.bf16.msra.mxu1 %v1092_v37 }
 0x6e2   :  { %1055 = vmatprep.subr.bf16.mxu1 %v1189_v15 }
 0x6e5   :  { %1056 = vmatpush3.bf16.msra.mxu1 %v1093_v38 }
 0x6e6   :  { %1057 = vmatprep.subr.bf16.mxu1 %v1189_v15 }
 0x6e9   :  { %1058 = vmatpush3.bf16.msra.mxu1 %v1094_v39 }
 0x6ea   :  { %1059 = vmatprep.subr.bf16.mxu1 %v1189_v15 }
 0x6ed   :  { %1060 = vmatpush3.bf16.msra.mxu1 %v1095_v40 }
 0x7a3   :  { %v658_v61 = vpop.f32.mrb[4].mxu1 }
 0x7a4   :  { %v659_v62 = vadd.f32 %v936_v60, %v658_v61  ;;  %v1035_v63 = vpop.f32.mrb[5].mxu1  ;;  %v946_v61 = vld [vmem:[%s1522_s13] ss:$0 sm:$0xff] }
 0x7a5   :  { %v661_v2 = vpop.f32.mrb[6].mxu1 }
 0x7a6   :  { %v1426_v3 = vadd.f32 %v659_v62, %v1289_v0  ;;  %v662_v47 = vadd.f32 %v936_v60, %v661_v2  ;;  %v1036_v4 = vpop.f32.mrb[7].mxu1 }
 0x7a8   :  { %v1429_v5 = vadd.f32 %v662_v47, %v1291_v1  ;;  %v667_v45 = vsel %vm69_vm0, %v1426_v3, 0.0 }
 0x7a9   :  { %668 = vadd.xlane.f32.xlu0 %v667_v45 }
 0x7aa   :  { %v670_v6 = vsel %vm69_vm0, %v1429_v5, 0.0 }
 0x7ab   :  { %671 = vadd.xlane.f32.xlu1 %v670_v6 }
 0x836   :  { %v669_v7 = vpop.xlane.xlu0 %668 }
 0x837   :  { %v673_v8 = vmul.f32 0.03125, %v669_v7 }
 0x838   :  { %v672_v9 = vpop.xlane.xlu1 %671 }
 0x839   :  { %v675_v10 = vsub.f32 %v1426_v3, %v673_v8  ;;  %v674_v0 = vmul.f32 0.03125, %v672_v9 }
 0x83b   :  { %v676_v43 = vsub.f32 %v1429_v5, %v674_v0  ;;  %v677_v11 = vmul.f32 %v675_v10, %v675_v10 }
 0x83d   :  { %v679_v1 = vsel %vm69_vm0, %v677_v11, 0.0  ;;  %v678_v12 = vmul.f32 %v676_v43, %v676_v43 }
 0x83e   :  { %680 = vadd.xlane.f32.xlu0 %v679_v1 }
 0x83f   :  { %v682_v13 = vsel %vm69_vm0, %v678_v12, 0.0 }
 0x842   :  { %683 = vadd.xlane.f32.xlu0 %v682_v13 }
 0x8cb   :  { %v681_v50 = vpop.xlane.xlu0 %680 }
 0x8cc   :  { %v685_v17 = vmul.f32 0.03125, %v681_v50 }
 0x8ce   :  { %v687_v18 = vadd.f32 1e-05, %v685_v17 }
 0x8cf   :  { %v684_v19 = vpop.xlane.xlu0 %683 }
 0x8d0   :  { %1132 = vrsqrt.f32 %v687_v18  ;;  %v686_v20 = vmul.f32 0.03125, %v684_v19 }
 0x8d2   :  { %v688_v21 = vadd.f32 1e-05, %v686_v20 }
 0x8d4   :  { %1134 = vrsqrt.f32 %v688_v21 }
 0x8da   :  { %v1133_v22 = vpop.eup %1132 }
 0x8db   :  { %v691_v23 = vmul.f32 %v1133_v22, %v675_v10 }
 0x8dd   :  { %v700_v26 = vmul.f32 %v940_v24, %v691_v23 }
 0x8de   :  { %v1135_v25 = vpop.eup %1134 }
 0x8df   :  { %v692_v27 = vmul.f32 %v1135_v25, %v676_v43  ;;  %v709_v30 = vadd.f32 %v941_v28, %v700_v26 }
 0x8e1   :  { %v701_v29 = vmul.f32 %v940_v24, %v692_v27 }
 0x8e3   :  { %v710_v31 = vadd.f32 %v941_v28, %v701_v29 }
 0x8e5   :  { %v711_v32 = vpack.c.bf16 %v710_v31, %v709_v30 }
 0x8e7   :  { %1042 = vmatmul.mubr.msk.bf16.vlgmr.msra.gmra.mrb[16].mxu0 %vm69_vm0, %v711_v32 }
 0x9ba   :  { %v772_v42 = vpop.f32.mrb[16].mxu0 }
 0x9bb   :  { %v1043_v44 = vpop.f32.mrb[17].mxu0  ;;  %v773_v48 = vadd.f32 %v942_v41, %v772_v42 }
 0x9bc   :  { %v775_v46 = vpop.f32.mrb[18].mxu0 }
 0x9bd   :  { %v776_v49 = vadd.f32 %v942_v41, %v775_v46  ;;  %v1044_v51 = vpop.f32.mrb[19].mxu0 }
 0x9bf   :  { %v779_v52 = vpack.c.bf16 %v776_v49, %v773_v48 }
 0x9c1   :  { %v781_v53 = vmul.bf16 1027030327, %v779_v52  ;;  %v780_v15 = vmul.bf16 1056980736, %v779_v52 }
 0x9c3   :  { %v782_v54 = vmul.bf16 %v781_v53, %v779_v52 }
 0x9c5   :  { %v783_v55 = vmul.bf16 %v782_v54, %v779_v52 }
 0x9c7   :  { %v784_v56 = vadd.bf16 %v783_v55, %v779_v52 }
 0x9c9   :  { %v785_v57 = vmul.bf16 1061961548, %v784_v56 }
 0x9cb   :  { %1136 = vtanh.bf16 %v785_v57 }
 0x9d6   :  { %v1137_v58 = vpop.eup %1136 }
 0x9d7   :  { %v787_v59 = vadd.bf16 1065369472, %v1137_v58 }
 0x9d9   :  { %v788_v60 = vmul.bf16 %v787_v59, %v780_v15 }
 0x9db   :  { %1062 = vmatmul.mubr.bf16.vlgmr.msra.gmra.mrb[8].mxu1 %v788_v60 }
 0xaae   :  { %v894_v62 = vpop.f32.mrb[8].mxu1 }
 0xaaf   :  { %v895_v63 = vadd.f32 %v946_v61, %v894_v62  ;;  %v1063_v2 = vpop.f32.mrb[9].mxu1 }
 0xab0   :  { %v897_v47 = vpop.f32.mrb[10].mxu1 }
 0xab1   :  { %v901_v4 = vadd.f32 %v895_v63, %v1426_v3  ;;  %v898_v45 = vadd.f32 %v946_v61, %v897_v47  ;;  %v1064_v6 = vpop.f32.mrb[11].mxu1 }
 0xab3   :  { %903 = vst.msk [vmem:[#allocation6] sm:$0xff] %vm69_vm0, %v901_v4  ;;  %v902_v7 = vadd.f32 %v898_v45, %v1429_v5 }
 0xab5   :  { %904 = vst.msk [vmem:[#allocation6 + $0x8] sm:$0xff] %vm69_vm0, %v902_v7 }
 0xab6   :  { %1171 = shalt.err (!%p1168_p12)
}
 0xab7   :  { %s1172_s20 = scalar_lea.hbm %s1523_s14, 256 }
 0xab8   :  { %p1173_p13 = scmp.ne.s32.totalorder %s1523_s14, %s1172_s20  ;;  %p1176_p0 = scmp.lt.u32.totalorder %s1172_s20, %s1523_s14 }
 0xaba   :  { %p1178_p1 = pnand %p1176_p0, %p1173_p13 }
 0xabc   :  { %1181 = shalt.err (!%p1178_p1)
}
 0xabd   :  { %916 = dma.vmem_to_hbm [thread:$0]  %s911_s19, 256, %s1523_s14, [#allocation5], %s1187_s23, %s1187_s23, %s1188_s24  }
 0xabe   :  { %1184 = dma.done.wait [#allocation5], 256  }
 0xabf   :  { %1185 = vsyncadd [#allocation5], 4294967040 }
 0xac0   :  { %920 = vsyncpa [#allocation4], 1 }
 0xac1   :  { %921 = vsyncpa [#allocation5], 1 }

</bundles_post_ra>
